<compile_context>
chip_gen: v7x
topology: tpu7x:2x2x1
jax: 0.10.0
libtpu: 0.0.40
codegen_flags: <defaults>
</compile_context>

<pallas_src>
import jax
import jax.numpy as jnp
from jax.experimental import pallas as pl
from jax.experimental.pallas import tpu as pltpu

# ----------------------------- configuration -------------------------------
BATCH = 2
N_SUB = 7            # torch.split(input_id, 1, dim=1) yields 7 sub-tensors
MAX_SEQ_LEN = 8
HIDDEN = 32          # GPT-2 hidden size (stand-in)
COMPRESSION = 4      # AdaptiveMaxPool1d output size
NUM_CLASSES = 5
VOCAB = 64

FEATURES = COMPRESSION * MAX_SEQ_LEN * N_SUB     # fc1 input features = 224
FEAT_PAD = 256                                   # contraction dim, 2 x 128 lanes
C_PAD = 128                                      # lane-dense output width
HK = HIDDEN // COMPRESSION                       # pool window size = 8

# Fused-reshape pooling requires uniform bins; PyTorch adaptive bins are
# uniform exactly when HIDDEN % COMPRESSION == 0.
assert HIDDEN % COMPRESSION == 0, "fused pooling path requires uniform bins"

# f32 everywhere the VPU touches data (v5e has no bf16 VPU); bf16 only for the
# MXU operands (all generations take bf16 on the MXU with f32 accumulation).
POOL_DTYPE = jnp.float32     # flip to jnp.bfloat16 on v6e/v7x to halve x DMA
MXU_DTYPE = jnp.bfloat16


def _adaptive_bins(in_size: int, out_size: int):
    """Exact PyTorch AdaptiveMaxPool1d bin boundaries (for the reference)."""
    bins = []
    for i in range(out_size):
        start = (i * in_size) // out_size
        end = -((-(i + 1) * in_size) // out_size)   # ceil((i+1)*in/out)
        bins.append((start, end))
    return tuple(bins)


# ------------------------------- kernel ------------------------------------
def _classifier_kernel(x_ref, w_ref, out_ref):
    # x_ref:   (B, HK, FEAT_PAD) f32 — exact (8,128) tiles; the HK (sublane)
    #          axis is the pool-reduction axis.  Lane FEATURES is a constant-1
    #          bias column; lanes FEATURES+1.. are zero padding.
    # w_ref:   (FEAT_PAD, C_PAD) bf16 — fc1.weight.T zero-padded; row FEATURES
    #          holds fc1.bias (so the bias rides the MXU for free).
    # out_ref: (B, C_PAD) f32 — lane-dense; wrapper slices [:, :NUM_CLASSES].
    m = jnp.max(x_ref[...], axis=1)                       # sublane reduce (XLU)
    out_ref[...] = jnp.dot(
        m.astype(w_ref.dtype), w_ref[...],
        preferred_element_type=jnp.float32,
    ).astype(out_ref.dtype)


# --------------------------- one-time param packing -------------------------
def pack_fc1_params(fc1_weight, fc1_bias):
    """Transpose + pad fc1 params, fold bias in as an extra row, cast to bf16."""
    w_pad = jnp.zeros((FEAT_PAD, C_PAD), jnp.float32)
    w_pad = w_pad.at[:FEATURES, :NUM_CLASSES].set(fc1_weight.T.astype(jnp.float32))
    w_pad = w_pad.at[FEATURES, :NUM_CLASSES].set(fc1_bias.astype(jnp.float32))
    return w_pad.astype(MXU_DTYPE)


def pack_embeddings(tok_emb, pos_emb):
    """Fold the pool-window permutation of the hidden dim into the tables.

    Hidden index h = k*HK + r (uniform adaptive bins), so H reshapes to
    (K, HK); reorder to (HK, K) so the producer emits x with the pool
    reduction (HK) axis as a standalone sublane dimension.
    """
    tok_p = tok_emb.reshape(VOCAB, COMPRESSION, HK).transpose(0, 2, 1)
    pos_p = pos_emb.reshape(MAX_SEQ_LEN, COMPRESSION, HK).transpose(0, 2, 1)
    return tok_p.astype(POOL_DTYPE), pos_p.astype(POOL_DTYPE)   # (V,HK,K),(S,HK,K)


# --------------------------- GPT-2 stand-in (glue) --------------------------
def gpt2_standin_packed(input_id, mask, tok_p, pos_p):
    """Deterministic GPT2Model stand-in emitting pool-major layout directly.

    input_id/mask: (B, N_SUB, S) -> x_feat (B, HK, N_SUB*S*K).
    """
    h = tok_p[input_id] + pos_p[None, None]                  # (B, N, S, HK, K)
    h = h * mask[..., None, None].astype(h.dtype)
    h = jnp.transpose(h, (0, 3, 1, 2, 4))                    # (B, HK, N, S, K)
    B = input_id.shape[0]
    return h.reshape(B, HK, N_SUB * MAX_SEQ_LEN * COMPRESSION)


# ------------------------------- head wrapper -------------------------------
def classifier_head(x_feat, w_pad):
    """x_feat: (B, HK, FEATURES) f32 -> logits (B, NUM_CLASSES) f32."""
    B = x_feat.shape[0]
    # Constant-1 bias column + zero pad to 256 lanes (stays inside the same
    # producer fusion; zero weight rows make the padding a no-op).
    ones = jnp.ones((B, HK, 1), x_feat.dtype)
    zeros = jnp.zeros((B, HK, FEAT_PAD - FEATURES - 1), x_feat.dtype)
    x = jnp.concatenate([x_feat, ones, zeros], axis=-1)       # (B, HK, FEAT_PAD)

    cost = pl.CostEstimate(
        flops=2 * B * FEAT_PAD * C_PAD,
        transcendentals=0,
        bytes_accessed=(
            x.size * x.dtype.itemsize
            + w_pad.size * w_pad.dtype.itemsize
            + B * C_PAD * 4
        ),
    )

    out_pad = pl.pallas_call(
        _classifier_kernel,
        out_shape=jax.ShapeDtypeStruct((B, C_PAD), jnp.float32),
        in_specs=[
            pl.BlockSpec(memory_space=pltpu.MemorySpace.VMEM),
            pl.BlockSpec(memory_space=pltpu.MemorySpace.VMEM),
        ],
        out_specs=pl.BlockSpec(memory_space=pltpu.MemorySpace.VMEM),
        cost_estimate=cost,
    )(x, w_pad)

    return out_pad[:, :NUM_CLASSES]


@jax.jit
def forward(input_id, mask, tok_p, pos_p, w_pad):
    """Producer + head fused under one jit (single producer fusion feeds the
    pallas_call input; no intermediate (B,N,S,H) repack round-trip)."""
    x_feat = gpt2_standin_packed(input_id, mask, tok_p, pos_p)
    return classifier_head(x_feat, w_pad)


# --------------------------- pure-JAX f32 reference -------------------------
def reference(input_id, mask, tok_emb, pos_emb, fc1_weight, fc1_bias):
    """Exact PyTorch-semantics reference from the ORIGINAL (unpacked) tables."""
    h = tok_emb[input_id] + pos_emb[None, None]               # (B, N, S, H)
    gpt_out = h * mask[..., None].astype(jnp.float32)
    bins = _adaptive_bins(HIDDEN, COMPRESSION)
    pooled = jnp.stack(
        [jnp.max(gpt_out[..., s:e], axis=-1) for (s, e) in bins], axis=-1
    )                                                         # (B, N, S, K)
    flat = pooled.reshape(gpt_out.shape[0], -1)               # (B, 224)
    return flat @ fc1_weight.T + fc1_bias


# ----------------------------------- main -----------------------------------
if __name__ == "__main__":
    key = jax.random.PRNGKey(0)
    k_ids, k_mask, k_tok, k_pos, k_w, k_b = jax.random.split(key, 6)

    input_id = jax.random.randint(
        k_ids, (BATCH, N_SUB, MAX_SEQ_LEN), 0, VOCAB, dtype=jnp.int32
    )
    mask = (jax.random.uniform(k_mask, (BATCH, N_SUB, MAX_SEQ_LEN)) > 0.2).astype(
        jnp.int32
    )

    tok_emb = jax.random.normal(k_tok, (VOCAB, HIDDEN), jnp.float32) * 0.02
    pos_emb = jax.random.normal(k_pos, (MAX_SEQ_LEN, HIDDEN), jnp.float32) * 0.02
    fc1_weight = jax.random.normal(k_w, (NUM_CLASSES, FEATURES), jnp.float32) * (
        1.0 / FEATURES**0.5
    )
    fc1_bias = jax.random.normal(k_b, (NUM_CLASSES,), jnp.float32) * 0.01

    # One-time packing (pre-transposed / padded / permuted constants).
    w_pad = pack_fc1_params(fc1_weight, fc1_bias)
    tok_p, pos_p = pack_embeddings(tok_emb, pos_emb)

    out = forward(input_id, mask, tok_p, pos_p, w_pad)
    out = jax.block_until_ready(out)

    ref = reference(input_id, mask, tok_emb, pos_emb, fc1_weight, fc1_bias)

    assert out.shape == (BATCH, NUM_CLASSES)
    # Tolerance loosened vs. the f32 reference because the fc1 weight (and the
    # pooled LHS at the MXU boundary) are bf16; accumulation stays f32.
    assert jnp.allclose(out, ref, atol=1e-2, rtol=1e-2), (out, ref)

    print("KERNEL_OK")
</pallas_src>

<mosaic_0001>
module attributes {stable_mosaic.version = 11 : i64} {
  func.func @_classifier_kernel(%arg0: memref<2x8x256xf32, #tpu.memory_space<vmem>>, %arg1: memref<256x128xbf16, #tpu.memory_space<vmem>>, %arg2: memref<2x128xf32, #tpu.memory_space<vmem>>) attributes {dimension_semantics = [], scalar_prefetch = 0 : i64, scratch_operands = 0 : i64, tpu.core_type = #tpu.core_type<tc>} {
    %c0 = arith.constant 0 : index
    %c0_0 = arith.constant 0 : index
    %c0_1 = arith.constant 0 : index
    %0 = vector.load %arg0[%c0, %c0_0, %c0_1] : memref<2x8x256xf32, #tpu.memory_space<vmem>>, vector<2x8x256xf32>
    %cst = arith.constant dense<0xFF800000> : vector<2x256xf32>
    %1 = vector.multi_reduction <maximumf>, %0, %cst [1] : vector<2x8x256xf32> to vector<2x256xf32>
    %2 = arith.truncf %1 : vector<2x256xf32> to vector<2x256xbf16>
    %c0_2 = arith.constant 0 : index
    %c0_3 = arith.constant 0 : index
    %3 = vector.load %arg1[%c0_2, %c0_3] : memref<256x128xbf16, #tpu.memory_space<vmem>>, vector<256x128xbf16>
    %cst_4 = arith.constant dense<0.000000e+00> : vector<2x128xf32>
    %4 = tpu.matmul %2, %3, %cst_4 {dimension_numbers = #tpu.dot_dimension_numbers<[1], [0], [0], [1], [0, 0, 1, 1], [], []>} : vector<2x256xbf16>, vector<256x128xbf16>, vector<2x128xf32> -> vector<2x128xf32>
    %c0_5 = arith.constant 0 : index
    %c0_6 = arith.constant 0 : index
    %5 = vector.load %arg2[%c0_5, %c0_6] : memref<2x128xf32, #tpu.memory_space<vmem>>, vector<2x128xf32>
    tpu.vector_store %arg2[%c0_5, %c0_6], %4 {strides = array<i32>} : memref<2x128xf32, #tpu.memory_space<vmem>>, vector<2x128xf32>,
    return
  }
}

</mosaic_0001>

<bundles_post_ra>
// kernel: forward.1
= control target key start
LH: loop header
LB: loop body
LE: loop exit
PB: predicated region body
PF: predicated region fallthrough
CT: control target
= control target key end

     0   :  { %s410_s0 = inlined_call_operand.vmem [shape: f32[2,8,256], index: 0, kind: input, shape index: {}]   ;;  %s411_s1 = inlined_call_operand.vmem [shape: bf16[256,128], index: 1, kind: input, shape index: {}]   ;;  %s412_s2 = inlined_call_operand.hbm [shape: f32[2,128], index: 2, kind: output, shape index: {}]  }
   0x1   :  { %v282_v0 = vld [vmem:[%s411_s1 + $0x40] sm:$0xff]   ;;  %v284_v2 = vld [vmem:[%s411_s1 + $0x48] sm:$0xff]   ;;  %v286_v4 = vld [vmem:[%s411_s1 + $0x50] sm:$0xff]  }
   0x2   :  { %v283_v1 = vld [vmem:[%s411_s1] sm:$0xff]   ;;  %259 = vmatprep.subr.bf16.mxu0 %v282_v0  ;;  %v285_v3 = vld [vmem:[%s411_s1 + $0x8] sm:$0xff]   ;;  %v287_v5 = vld [vmem:[%s411_s1 + $0x10] sm:$0xff]  }
   0x3   :  { %260 = vmatpush3.bf16.msra.mxu0 %v283_v1  ;;  %v288_v6 = vld [vmem:[%s411_s1 + $0x58] sm:$0xff]   ;;  %v290_v8 = vld [vmem:[%s411_s1 + $0x60] sm:$0xff]   ;;  %v292_v10 = vld [vmem:[%s411_s1 + $0x68] sm:$0xff]  }
   0x4   :  { %261 = vmatprep.subr.bf16.mxu0 %v284_v2  ;;  %v289_v7 = vld [vmem:[%s411_s1 + $0x18] sm:$0xff]   ;;  %v291_v9 = vld [vmem:[%s411_s1 + $0x20] sm:$0xff]   ;;  %v14_v11 = vld [vmem:[%s410_s0 + $0x8] sm:$0xff] }
   0x5   :  { %v16_v12 = vld [vmem:[%s410_s0 + $0x18] sm:$0xff]  ;;  %v13_v13 = vld [vmem:[%s410_s0] sm:$0xff]  ;;  %v23_v14 = vrot.slane %v14_v11, 4  ;;  %v15_v16 = vld [vmem:[%s410_s0 + $0x10] sm:$0xff] }
   0x6   :  { %v35_v15 = vrot.slane %v16_v12, 4  ;;  %v17_v17 = vrot.slane %v13_v13, 4 }
   0x7   :  { %262 = vmatpush3.bf16.msra.mxu0 %v285_v3 }
   0x8   :  { %263 = vmatprep.subr.bf16.mxu0 %v286_v4 }
   0xb   :  { %264 = vmatpush3.bf16.msra.mxu0 %v287_v5 }
   0xc   :  { %265 = vmatprep.subr.bf16.mxu0 %v288_v6 }
   0xf   :  { %266 = vmatpush3.bf16.msra.mxu0 %v289_v7 }
  0x10   :  { %267 = vmatprep.subr.bf16.mxu0 %v290_v8 }
  0x11   :  { %7 = vsyncpa [#allocation3], 0  ;;  %v29_v18 = vrot.slane %v15_v16, 4  ;;  %v293_v19 = vld [vmem:[%s411_s1 + $0x28] sm:$0xff]   ;;  %v24_v20 = vmax.f32 %v14_v11, %v23_v14  ;;  %v36_v21 = vmax.f32 %v16_v12, %v35_v15  ;;  %v18_v22 = vmax.f32 %v13_v13, %v17_v17  ;;  %v294_v23 = vld [vmem:[%s411_s1 + $0x70] sm:$0xff]  }
  0x12   :  { %v295_v29 = vld [vmem:[%s411_s1 + $0x30] sm:$0xff]   ;;  %v296_v33 = vld [vmem:[%s411_s1 + $0x78] sm:$0xff]   ;;  %vm85_vm0 = vcmask 1041409  }
  0x13   :  { %268 = vmatpush3.bf16.msra.mxu0 %v291_v9  ;;  %v30_v24 = vmax.f32 %v15_v16, %v29_v18  ;;  %v25_v25 = vrot.slane %v24_v20, 2  ;;  %v37_v26 = vrot.slane %v36_v21, 2  ;;  %v19_v27 = vrot.slane %v18_v22, 2  ;;  %v297_v39 = vld [vmem:[%s411_s1 + $0x38] sm:$0xff]   ;;  %s322_s1 = smov [#allocation2]  }
  0x14   :  { %269 = vmatprep.subr.bf16.mxu0 %v292_v10  ;;  %s235_s20 = sshll.u32 %s322_s1, 4  ;;  %s236_s20 = int_to_ptr.vmem [resolvable:$true] %s235_s20 }
  0x15   :  { %v31_v28 = vrot.slane %v30_v24, 2  ;;  %v26_v30 = vmax.f32 %v24_v20, %v25_v25  ;;  %v38_v31 = vmax.f32 %v36_v21, %v37_v26  ;;  %v20_v32 = vmax.f32 %v18_v22, %v19_v27  ;;  %s298_s21 = scalar_lea.vmem %s236_s20, 32  ;;  %p303_p1 = scmp.lt.s32.totalorder %s236_s20, %s236_s20 }
  0x16   :  { %p299_p0 = scmp.ne.s32.totalorder %s236_s20, %s298_s21  ;;  %p304_p2 = scmp.lt.s32.totalorder %s298_s21, %s298_s21 }
  0x17   :  { %270 = vmatpush3.bf16.msra.mxu0 %v293_v19  ;;  %v32_v34 = vmax.f32 %v30_v24, %v31_v28  ;;  %v27_v35 = vrot.slane %v26_v30, 1  ;;  %v39_v36 = vrot.slane %v38_v31, 1  ;;  %v21_v37 = vrot.slane %v20_v32, 1 }
  0x18   :  { %271 = vmatprep.subr.bf16.mxu0 %v294_v23  ;;  %p305_p3 = por %p304_p2, %p303_p1 }
  0x19   :  { %v33_v38 = vrot.slane %v32_v34, 1  ;;  %v28_v40 = vmax.f32 %v26_v30, %v27_v35  ;;  %v40_v41 = vmax.f32 %v38_v31, %v39_v36  ;;  %v22_v42 = vmax.f32 %v20_v32, %v21_v37 }
  0x1a   :  { %p306_p4 = pnand %p305_p3, %p299_p0 }
  0x1b   :  { %272 = vmatpush3.bf16.msra.mxu0 %v295_v29  ;;  %v34_v43 = vmax.f32 %v32_v34, %v33_v38  ;;  %v42_v44 = vpack.c.bf16 %v28_v40, %v28_v40  ;;  %v44_v45 = vpack.c.bf16 %v40_v41, %v40_v41  ;;  %v41_v46 = vpack.c.bf16 %v22_v42, %v22_v42 }
  0x1c   :  { %273 = vmatprep.subr.bf16.mxu0 %v296_v33 }
  0x1d   :  { %v43_v47 = vpack.c.bf16 %v34_v43, %v34_v43  ;;  %v82_v48 = vunpack.c.l.b16 %v42_v44  ;;  %v84_v49 = vunpack.c.l.b16 %v44_v45  ;;  %v81_v50 = vunpack.c.l.b16 %v41_v46 }
  0x1f   :  { %274 = vmatpush3.bf16.msra.mxu0 %v297_v39  ;;  %v83_v51 = vunpack.c.l.b16 %v43_v47  ;;  %v87_v52 = vsel %vm85_vm0, %v84_v49, %v82_v48 }
  0x20   :  { %v89_v53 = vpack.c.b16 %v87_v52, %v87_v52 }
  0x21   :  { %v86_v54 = vsel %vm85_vm0, %v83_v51, %v81_v50 }
  0x22   :  { %v88_v55 = vpack.c.b16 %v86_v54, %v86_v54  ;;  %220 = vmatprep.mubr.bf16.mxu0 %v89_v53 }
  0x24   :  { %221 = vmatmul.mubr.bf16.vlgmr.msra.gmra.mrb[0].mxu0 %v88_v55 }
  0xf7   :  { %v275_v56 = vpop.f32.mrb[0].mxu0 }
  0xf8   :  { %v276_v57 = vpop.f32.mrb[1].mxu0 }
  0xf9   :  { %v277_v58 = vadd.f32 %v276_v57, %v275_v56  ;;  %v278_v59 = vpop.f32.mrb[2].mxu0 }
  0xfa   :  { %v279_v60 = vpop.f32.mrb[3].mxu0 }
  0xfb   :  { %228 = vst [vmem:[#allocation2] sm:$0x3] %v277_v58 }
  0xfc   :  { %309 = shalt.err (!%p306_p4)
}
  0xfd   :  { %s310_s24 = scalar_lea.hbm %s412_s2, 32 }
  0xfe   :  { %p311_p5 = scmp.ne.s32.totalorder %s412_s2, %s310_s24  ;;  %p314_p6 = scmp.lt.u32.totalorder %s310_s24, %s412_s2 }
 0x100   :  { %p316_p7 = pnand %p314_p6, %p311_p5 }
 0x102   :  { %319 = shalt.err (!%p316_p7)
}
 0x103   :  { %238 = dma.vmem_to_hbm [thread:$0]  %s236_s20, 32, %s412_s2, [#allocation3]  }
 0x104   :  { %320 = dma.done.wait [#allocation3], 32  }
 0x105   :  { %321 = vsyncadd [#allocation3], 4294967264 }
 0x106   :  { %242 = vsyncpa [#allocation3], 1 }

</bundles_post_ra>
